<compile_context>
chip_gen: v5e
topology: v5e:2x2
jax: 0.10.0
libtpu: 0.0.40
codegen_flags: <defaults>
</compile_context>

<pallas_src>
import functools

import jax
import jax.numpy as jnp
from jax.experimental import pallas as pl
from jax.experimental.pallas import tpu as pltpu


def _round_up(x, m):
    return (x + m - 1) // m * m


def cnn_kernel(x_ref, w_ref, b_ref, wfc_ref, bfc_ref, out_ref, *, tile_b, l_pad, l_real):
    # x_ref  : (tile_b * Lp, D) bf16  token embeddings for tile_b batch elements
    # w_ref  : (D, Fp)          bf16  fused conv weights  [w3 | w4 | w5 | 0-pad]
    # b_ref  : (1, Fp)          f32   fused conv biases   [b3 | b4 | b5 | 0-pad]
    # wfc_ref: (Fp, Op)         bf16  fc weight, zero-padded rows/cols
    # bfc_ref: (1, Op)          f32   fc bias, padded cols = -1e30 (killed by log_softmax)
    # out_ref: (tile_b, Op)     f32   log-probs for this batch tile

    # conv with a (1, D) kernel == matmul over the embedding dim (single fused MXU call
    # covering every token of every batch element in the tile)
    h = jnp.dot(x_ref[...], w_ref[...], preferred_element_type=jnp.float32)
    h = jnp.maximum(h + b_ref[...], 0.0)                     # bias + ReLU in f32

    fp = h.shape[-1]
    # Layout-preserving split of the row axis: Lp % 8 == 0 and Fp % 128 == 0, so no
    # (8,128)-tile boundary is crossed.
    h3 = h.reshape(tile_b, l_pad, fp)

    if l_pad != l_real:
        # Padded token rows are forced to 0; ReLU output >= 0, so the max-pool over
        # the sequence is unchanged.
        tok = jax.lax.broadcasted_iota(jnp.int32, h3.shape, 1)
        h3 = jnp.where(tok < l_real, h3, 0.0)

    # max-pool over the sequence = sublane-axis max
    pooled = jnp.max(h3, axis=1)                             # (tile_b, Fp)

    # fully-connected layer (dropout = identity at inference)
    logits = jnp.dot(pooled.astype(jnp.bfloat16), wfc_ref[...],
                     preferred_element_type=jnp.float32) + bfc_ref[...]

    # log_softmax along the class dim (padded cols carry -1e30 -> contribute ~0)
    m = jnp.max(logits, axis=-1, keepdims=True)
    s = logits - m
    lse = jnp.log(jnp.sum(jnp.exp(s), axis=-1, keepdims=True))
    out_ref[...] = s - lse


def cnn_forward(sentence, params, *, tile_b=None):
    """CNNModel.forward (inference). sentence: (B, L) int32 token ids."""
    B, L = sentence.shape
    D = params["embedding"].shape[1]
    F_ = params["w3"].shape[1]
    out_dim = params["bfc"].shape[-1]

    f_pad = _round_up(3 * F_, 128)      # lane-dense fused conv width
    o_pad = _round_up(out_dim, 128)     # lane-dense logits width
    l_pad = _round_up(L, 8)             # sublane-aligned token count per example

    if tile_b is None:
        # Batch tile: big enough to amortise per-grid-step overhead, small enough
        # that the double-buffered token tile stays comfortably inside VMEM (~4 MiB).
        max_b = max(8, ((4 << 20) // (l_pad * D * 2)) // 8 * 8)
        tile_b = min(_round_up(B, 8), max_b, 64)
    b_pad = _round_up(B, tile_b)

    # Embedding gather stays in XLA; the table is cast to bf16 so the (B, L, D) stream
    # the kernel reads is half the bytes.
    # TODO(synk): fold the gather into the kernel (scalar-prefetch token ids + per-row
    # DMA) to remove the extra HBM round trip of the materialized embeddings at scale.
    emb = params["embedding"].astype(jnp.bfloat16)[sentence]            # (B, L, D)
    emb = jnp.pad(emb, ((0, b_pad - B), (0, l_pad - L), (0, 0)))
    emb2d = emb.reshape(b_pad * l_pad, D)                               # flatten outside kernel

    # Fuse + pad the three conv branches; pad the FC to lane-dense shapes.
    w_fused = jnp.concatenate([params["w3"], params["w4"], params["w5"]], axis=1)
    w_fused = jnp.pad(w_fused, ((0, 0), (0, f_pad - 3 * F_))).astype(jnp.bfloat16)
    b_fused = jnp.concatenate([params["b3"], params["b4"], params["b5"]], axis=1)
    b_fused = jnp.pad(b_fused, ((0, 0), (0, f_pad - 3 * F_))).astype(jnp.float32)

    wfc = jnp.pad(params["wfc"],
                  ((0, f_pad - 3 * F_), (0, o_pad - out_dim))).astype(jnp.bfloat16)
    bfc = jnp.pad(params["bfc"].astype(jnp.float32),
                  ((0, 0), (0, o_pad - out_dim)), constant_values=-1e30)

    kernel = functools.partial(cnn_kernel, tile_b=tile_b, l_pad=l_pad, l_real=L)
    rows = tile_b * l_pad
    out = pl.pallas_call(
        kernel,
        out_shape=jax.ShapeDtypeStruct((b_pad, o_pad), jnp.float32),
        grid_spec=pltpu.PrefetchScalarGridSpec(
            num_scalar_prefetch=0,
            grid=(b_pad // tile_b,),
            in_specs=[
                pl.BlockSpec((rows, D), lambda i: (i, 0)),       # this batch tile's tokens
                pl.BlockSpec((D, f_pad), lambda i: (0, 0)),      # weights stay resident
                pl.BlockSpec((1, f_pad), lambda i: (0, 0)),
                pl.BlockSpec((f_pad, o_pad), lambda i: (0, 0)),
                pl.BlockSpec((1, o_pad), lambda i: (0, 0)),
            ],
            out_specs=pl.BlockSpec((tile_b, o_pad), lambda i: (i, 0)),
        ),
        compiler_params=pltpu.CompilerParams(
            dimension_semantics=("parallel",),   # batch-tile axis: megacore + pipelined DMA
        ),
    )(emb2d, w_fused, b_fused, wfc, bfc)

    return out[:B, :out_dim]


def cnn_reference(sentence, params):
    """Pure-JAX reference matching the PyTorch forward (inference; dropout = identity)."""
    emb = params["embedding"][sentence]                       # (B, L, D) f32
    feats = []
    for w, b in (("w3", "b3"), ("w4", "b4"), ("w5", "b5")):
        h = jnp.maximum(jnp.einsum("bld,df->blf", emb, params[w]) + params[b], 0.0)
        feats.append(jnp.max(h, axis=1))                      # max-pool over sequence
    cat = jnp.concatenate(feats, axis=-1)
    logits = cat @ params["wfc"] + params["bfc"]
    return jax.nn.log_softmax(logits, axis=-1)


def init_params(key, sentence_length, input_dim, output_dim, n_filters):
    ks = jax.random.split(key, 9)
    scale = 0.1
    # conv weights stored already transposed to (D, F) == Conv2d weight (F,1,1,D).T
    return {
        "embedding": scale * jax.random.normal(ks[0], (sentence_length, input_dim), jnp.float32),
        "w3": scale * jax.random.normal(ks[1], (input_dim, n_filters), jnp.float32),
        "b3": scale * jax.random.normal(ks[2], (1, n_filters), jnp.float32),
        "w4": scale * jax.random.normal(ks[3], (input_dim, n_filters), jnp.float32),
        "b4": scale * jax.random.normal(ks[4], (1, n_filters), jnp.float32),
        "w5": scale * jax.random.normal(ks[5], (input_dim, n_filters), jnp.float32),
        "b5": scale * jax.random.normal(ks[6], (1, n_filters), jnp.float32),
        "wfc": scale * jax.random.normal(ks[7], (3 * n_filters, output_dim), jnp.float32),
        "bfc": scale * jax.random.normal(ks[8], (1, output_dim), jnp.float32),
    }


if __name__ == "__main__":
    # Small shapes consistent with the module's forward.
    batch = 2
    seq_len = 8            # tokens per example
    sentence_length = 16   # nn.Embedding vocab size in the module
    input_dim = 32         # embedding dim
    n_filters = 32
    output_dim = 8

    key = jax.random.PRNGKey(0)
    k_idx, k_par = jax.random.split(key)
    params = init_params(k_par, sentence_length, input_dim, output_dim, n_filters)
    sentence = jax.random.randint(k_idx, (batch, seq_len), 0, sentence_length, dtype=jnp.int32)

    out = cnn_forward(sentence, params)
    jax.block_until_ready(out)

    assert out.shape == (batch, output_dim)
    # log_softmax rows should sum (in prob space) to ~1
    assert bool(jnp.allclose(jnp.sum(jnp.exp(out), axis=1), 1.0, atol=1e-3))
    # match the pure-JAX reference (bf16 MXU operands -> loose tolerance)
    ref = cnn_reference(sentence, params)
    assert bool(jnp.allclose(out, ref, atol=5e-2, rtol=5e-2))
    print("KERNEL_OK")
</pallas_src>

<mosaic_0001>
module attributes {stable_mosaic.version = 11 : i64} {
  func.func @cnn_kernel(%arg0: i32, %arg1: memref<64x32xbf16, #tpu.memory_space<vmem>>, %arg2: memref<32x128xbf16, #tpu.memory_space<vmem>>, %arg3: memref<1x128xf32, #tpu.memory_space<vmem>>, %arg4: memref<128x128xbf16, #tpu.memory_space<vmem>>, %arg5: memref<1x128xf32, #tpu.memory_space<vmem>>, %arg6: memref<8x128xf32, #tpu.memory_space<vmem>>) attributes {dimension_semantics = [#tpu.dimension_semantics<parallel>], iteration_bounds = array<i64: 1>, scalar_prefetch = 0 : i64, scratch_operands = 0 : i64, tpu.core_type = #tpu.core_type<tc>, window_params = [{transform_indices = @transform_0, window_bounds = array<i64: 64, 32>}, {pipeline_mode = #tpu.pipeline_mode<synchronous>, transform_indices = @transform_1, window_bounds = array<i64: 32, 128>}, {pipeline_mode = #tpu.pipeline_mode<synchronous>, transform_indices = @transform_2, window_bounds = array<i64: 1, 128>}, {pipeline_mode = #tpu.pipeline_mode<synchronous>, transform_indices = @transform_3, window_bounds = array<i64: 128, 128>}, {pipeline_mode = #tpu.pipeline_mode<synchronous>, transform_indices = @transform_4, window_bounds = array<i64: 1, 128>}, {transform_indices = @transform_5, window_bounds = array<i64: 8, 128>}]} {
    %c0 = arith.constant 0 : index
    %c0_0 = arith.constant 0 : index
    %0 = vector.load %arg1[%c0, %c0_0] : memref<64x32xbf16, #tpu.memory_space<vmem>>, vector<64x32xbf16>
    %c0_1 = arith.constant 0 : index
    %c0_2 = arith.constant 0 : index
    %1 = vector.load %arg2[%c0_1, %c0_2] : memref<32x128xbf16, #tpu.memory_space<vmem>>, vector<32x128xbf16>
    %cst = arith.constant dense<0.000000e+00> : vector<64x128xf32>
    %2 = tpu.matmul %0, %1, %cst {dimension_numbers = #tpu.dot_dimension_numbers<[1], [0], [0], [1], [0, 0, 1, 1], [], []>} : vector<64x32xbf16>, vector<32x128xbf16>, vector<64x128xf32> -> vector<64x128xf32>
    %c0_3 = arith.constant 0 : index
    %c0_4 = arith.constant 0 : index
    %3 = vector.load %arg3[%c0_3, %c0_4] : memref<1x128xf32, #tpu.memory_space<vmem>>, vector<1x128xf32>
    %4 = vector.broadcast %3 : vector<1x128xf32> to vector<64x128xf32>
    %5 = arith.addf %2, %4 : vector<64x128xf32>
    %cst_5 = arith.constant 0.000000e+00 : f32
    %6 = vector.broadcast %cst_5 : f32 to vector<64x128xf32>
    %7 = arith.maximumf %5, %6 : vector<64x128xf32>
    %8 = vector.shape_cast %7 : vector<64x128xf32> to vector<8x8x128xf32>
    %cst_6 = arith.constant dense<0xFF800000> : vector<8x128xf32>
    %9 = vector.multi_reduction <maximumf>, %8, %cst_6 [1] : vector<8x8x128xf32> to vector<8x128xf32>
    %10 = arith.truncf %9 : vector<8x128xf32> to vector<8x128xbf16>
    %c0_7 = arith.constant 0 : index
    %c0_8 = arith.constant 0 : index
    %11 = vector.load %arg4[%c0_7, %c0_8] : memref<128x128xbf16, #tpu.memory_space<vmem>>, vector<128x128xbf16>
    %cst_9 = arith.constant dense<0.000000e+00> : vector<8x128xf32>
    %12 = tpu.matmul %10, %11, %cst_9 {dimension_numbers = #tpu.dot_dimension_numbers<[1], [0], [0], [1], [0, 0, 1, 1], [], []>} : vector<8x128xbf16>, vector<128x128xbf16>, vector<8x128xf32> -> vector<8x128xf32>
    %c0_10 = arith.constant 0 : index
    %c0_11 = arith.constant 0 : index
    %13 = vector.load %arg5[%c0_10, %c0_11] : memref<1x128xf32, #tpu.memory_space<vmem>>, vector<1x128xf32>
    %14 = vector.broadcast %13 : vector<1x128xf32> to vector<8x128xf32>
    %15 = arith.addf %12, %14 : vector<8x128xf32>
    %cst_12 = arith.constant dense<0xFF800000> : vector<8xf32>
    %16 = vector.multi_reduction <maximumf>, %15, %cst_12 [1] : vector<8x128xf32> to vector<8xf32>
    %17 = vector.shape_cast %16 : vector<8xf32> to vector<8x1xf32>
    %18 = vector.broadcast %17 : vector<8x1xf32> to vector<8x128xf32>
    %19 = arith.subf %15, %18 : vector<8x128xf32>
    %20 = math.exp %19 : vector<8x128xf32>
    %cst_13 = arith.constant dense<0.000000e+00> : vector<8xf32>
    %21 = vector.multi_reduction <add>, %20, %cst_13 [1] : vector<8x128xf32> to vector<8xf32>
    %22 = vector.shape_cast %21 : vector<8xf32> to vector<8x1xf32>
    %23 = math.log %22 : vector<8x1xf32>
    %24 = vector.broadcast %23 : vector<8x1xf32> to vector<8x128xf32>
    %25 = arith.subf %19, %24 : vector<8x128xf32>
    %c0_14 = arith.constant 0 : index
    %c0_15 = arith.constant 0 : index
    %26 = vector.load %arg6[%c0_14, %c0_15] : memref<8x128xf32, #tpu.memory_space<vmem>>, vector<8x128xf32>
    tpu.vector_store %arg6[%c0_14, %c0_15], %25 {strides = array<i32>} : memref<8x128xf32, #tpu.memory_space<vmem>>, vector<8x128xf32>,
    return
  }
  func.func @transform_0(%arg0: i32) -> (i32, i32) {
    %c0_i32 = arith.constant 0 : i32
    %c0_i32_0 = arith.constant 0 : i32
    return %arg0, %c0_i32 : i32, i32
  }
  func.func @transform_1(%arg0: i32) -> (i32, i32) {
    %c0_i32 = arith.constant 0 : i32
    %c0_i32_0 = arith.constant 0 : i32
    %c0_i32_1 = arith.constant 0 : i32
    return %c0_i32, %c0_i32_0 : i32, i32
  }
  func.func @transform_2(%arg0: i32) -> (i32, i32) {
    %c0_i32 = arith.constant 0 : i32
    %c0_i32_0 = arith.constant 0 : i32
    %c0_i32_1 = arith.constant 0 : i32
    return %c0_i32, %c0_i32_0 : i32, i32
  }
  func.func @transform_3(%arg0: i32) -> (i32, i32) {
    %c0_i32 = arith.constant 0 : i32
    %c0_i32_0 = arith.constant 0 : i32
    %c0_i32_1 = arith.constant 0 : i32
    return %c0_i32, %c0_i32_0 : i32, i32
  }
  func.func @transform_4(%arg0: i32) -> (i32, i32) {
    %c0_i32 = arith.constant 0 : i32
    %c0_i32_0 = arith.constant 0 : i32
    %c0_i32_1 = arith.constant 0 : i32
    return %c0_i32, %c0_i32_0 : i32, i32
  }
  func.func @transform_5(%arg0: i32) -> (i32, i32) {
    %c0_i32 = arith.constant 0 : i32
    %c0_i32_0 = arith.constant 0 : i32
    return %arg0, %c0_i32 : i32, i32
  }
}

</mosaic_0001>

<bundles_post_ra>
// kernel: tpu_custom_call.1
= control target key start
LH: loop header
LB: loop body
LE: loop exit
PB: predicated region body
PF: predicated region fallthrough
CT: control target
= control target key end

     0   :  { %10 = vsyncpa [#allocation3], 0  ;;  %s535_s0 = inlined_call_operand.vmem [shape: bf16[64,32], index: 0, kind: input, shape index: {}]   ;;  %s536_s1 = inlined_call_operand.vmem [shape: bf16[32,128], index: 1, kind: input, shape index: {}]   ;;  %s537_s2 = inlined_call_operand.vmem [shape: f32[1,128], index: 2, kind: input, shape index: {}]   ;;  %s538_s3 = inlined_call_operand.hbm [shape: bf16[128,128], index: 3, kind: input, shape index: {}]   ;;  %s539_s4 = inlined_call_operand.vmem [shape: f32[1,128], index: 4, kind: input, shape index: {}]   ;;  %s540_s5 = inlined_call_operand.hbm [shape: f32[8,128], index: 5, kind: output, shape index: {}]  }
   0x1   :  { %11 = vsyncpa [#allocation4], 0  ;;  %s22_s20 = sshll.u32 %s538_s3, 4  ;;  %s471_s21 = smov [#allocation2]   ;;  %s23_s20 = int_to_ptr.hbm [resolvable:$true] %s22_s20 }
   0x2   :  { %s24_s22 = sshll.u32 %s471_s21, 4  ;;  %s472_s23 = smov 64   ;;  %s25_s22 = int_to_ptr.vmem [resolvable:$true] %s24_s22 }
   0x3   :  { %s473_s24 = smov 4  }
   0x4   :  { %30 = dma.hbm_to_vmem [thread:$0]  %s23_s20, 1024, %s25_s22, [#allocation3], %s472_s23, %s472_s23, %s473_s24  }
   0x5   :  { %467 = dma.done.wait [#allocation3], 1024  }
   0x6   :  { %468 = vsyncadd [#allocation3], 4294966272  ;;  %v398_v0 = vld [vmem:[%s536_s1 + $0x8] sm:$0xff]  ;;  %v397_v1 = vld [vmem:[%s536_s1] sm:$0xff]  ;;  %vm86_vm0 = vcmask 261120   ;;  %vm228_vm1 = vcmask 1041409  }
   0x7   :  { %105 = vmatpush.bf16.msra.mxu0 %v398_v0  ;;  %407 = vmatpush.bf16.msra.mxu2 %v398_v0  ;;  %v393_v2 = vld [vmem:[%s535_s0] sm:$0xff]  ;;  %v395_v3 = vld [vmem:[%s535_s0 + $0x10] sm:$0xff]  ;;  %v394_v4 = vld [vmem:[%s535_s0 + $0x8] sm:$0xff]  ;;  %vm230_vm2 = vcmask 1042434   ;;  %vm232_vm3 = vcmask 1043459   ;;  %vm234_vm4 = vcmask 1044484  }
   0x8   :  { %v396_v5 = vld [vmem:[%s535_s0 + $0x18] sm:$0xff]  ;;  %v405_v7 = vld [vmem:[#allocation2 + $0x30] sm:$0xff]  ;;  %v404_v8 = vld [vmem:[#allocation2 + $0x28] sm:$0xff]  ;;  %vm236_vm5 = vcmask 1045509   ;;  %vm238_vm6 = vcmask 1046534   ;;  %vm240_vm7 = vcmask 1047559  }
   0x9   :  { %v406_v6 = vld [vmem:[#allocation2 + $0x38] sm:$0xff]  ;;  %v413_v10 = vld [vmem:[%s537_s2] ss:$0 sm:$0xff]  ;;  %v401_v19 = vld [vmem:[#allocation2 + $0x10] sm:$0xff]  ;;  %s474_s12 = smov [#allocation5]   ;;  %s323_s16 = sshll.u32 %s540_s5, 4  ;;  %s324_s16 = int_to_ptr.hbm [resolvable:$true] %s323_s16 }
   0xa   :  { %292 = vmatpush.bf16.msra.mxu1 %v406_v6  ;;  %v403_v11 = vld [vmem:[#allocation2 + $0x20] sm:$0xff]  ;;  %v402_v14 = vld [vmem:[#allocation2 + $0x18] sm:$0xff]  ;;  %v400_v23 = vld [vmem:[#allocation2 + $0x8] sm:$0xff]  ;;  %s321_s13 = sshll.u32 %s474_s12, 4  ;;  %s322_s13 = int_to_ptr.vmem [resolvable:$true] %s321_s13 }
   0xb   :  { %106 = vmatpush.bf16.msra.mxu0 %v397_v1  ;;  %408 = vmatpush.bf16.msra.mxu2 %v397_v1  ;;  %v399_v29 = vld [vmem:[#allocation2] sm:$0xff] }
   0xe   :  { %357 = vmatmul.msk.bf16.vlgmr.msra.gmra.mxu0 %vm86_vm0, %v393_v2  ;;  %359 = vmatmul.msk.bf16.vlgmr.msra.gmra.mxu2 %vm86_vm0, %v395_v3 }
   0xf   :  { %293 = vmatpush.bf16.msra.mxu1 %v405_v7 }
  0x13   :  { %294 = vmatpush.bf16.msra.mxu1 %v404_v8 }
  0x17   :  { %295 = vmatpush.bf16.msra.mxu1 %v403_v11 }
  0x1b   :  { %296 = vmatpush.bf16.msra.mxu1 %v402_v14 }
  0x1e   :  { %358 = vmatmul.msk.bf16.gmra.mxu0 %vm86_vm0, %v394_v4  ;;  %360 = vmatmul.msk.bf16.gmra.mxu2 %vm86_vm0, %v396_v5 }
  0x1f   :  { %297 = vmatpush.bf16.msra.mxu1 %v401_v19 }
  0x23   :  { %298 = vmatpush.bf16.msra.mxu1 %v400_v23 }
  0x27   :  { %299 = vmatpush.bf16.msra.mxu1 %v399_v29 }
  0x8b   :  { %v108_v9 = vpop.f32.mrf.mxu0 }
  0x8c   :  { %v109_v12 = vadd.f32 %v413_v10, %v108_v9 }
  0x8e   :  { %v128_v18 = vmax.f32 %v109_v12, 0.0 }
  0x90   :  { %v136_v24 = vrot.slane %v128_v18, 4 }
  0x91   :  { %v118_v13 = vpop.f32.mrf.mxu2 }
  0x92   :  { %v119_v16 = vadd.f32 %v413_v10, %v118_v13  ;;  %v137_v32 = vmax.f32 %v128_v18, %v136_v24 }
  0x93   :  { %v110_v15 = vpop.f32.mrf.mxu0 }
  0x94   :  { %v111_v17 = vadd.f32 %v413_v10, %v110_v15  ;;  %v132_v21 = vmax.f32 %v119_v16, 0.0  ;;  %v138_v38 = vrot.slane %v137_v32, 2 }
  0x96   :  { %v129_v20 = vmax.f32 %v111_v17, 0.0  ;;  %v160_v30 = vrot.slane %v132_v21, 4  ;;  %v139_v48 = vmax.f32 %v137_v32, %v138_v38 }
  0x98   :  { %v142_v22 = vrot.slane %v129_v20, 4  ;;  %v161_v37 = vmax.f32 %v132_v21, %v160_v30  ;;  %v140_v58 = vrot.slane %v139_v48, 1 }
  0x99   :  { %v120_v25 = vpop.f32.mrf.mxu2 }
  0x9a   :  { %v121_v26 = vadd.f32 %v413_v10, %v120_v25  ;;  %v143_v27 = vmax.f32 %v129_v20, %v142_v22  ;;  %v162_v46 = vrot.slane %v161_v37, 2  ;;  %v141_v7 = vmax.f32 %v139_v48, %v140_v58 }
  0x9b   :  { %v113_v28 = vpop.f32.mrf.mxu0 }
  0x9c   :  { %v133_v31 = vmax.f32 %v121_v26, 0.0  ;;  %v114_v33 = vadd.f32 %v413_v10, %v113_v28  ;;  %v144_v35 = vrot.slane %v143_v27, 2  ;;  %v163_v56 = vmax.f32 %v161_v37, %v162_v46 }
  0x9d   :  { %v184_v18 = vpack.c.bf16 %v141_v7, %v141_v7 }
  0x9e   :  { %v166_v34 = vrot.slane %v133_v31, 4  ;;  %v130_v36 = vmax.f32 %v114_v33, 0.0  ;;  %v145_v43 = vmax.f32 %v143_v27, %v144_v35  ;;  %v164_v3 = vrot.slane %v163_v56, 1 }
  0x9f   :  { %v220_v27 = vunpack.c.l.b16 %v184_v18 }
  0xa0   :  { %v167_v39 = vmax.f32 %v133_v31, %v166_v34  ;;  %v148_v40 = vrot.slane %v130_v36, 4  ;;  %v146_v53 = vrot.slane %v145_v43, 1  ;;  %v165_v15 = vmax.f32 %v163_v56, %v164_v3 }
  0xa1   :  { %v123_v41 = vpop.f32.mrf.mxu2 }
  0xa2   :  { %v124_v42 = vadd.f32 %v413_v10, %v123_v41  ;;  %v149_v44 = vmax.f32 %v130_v36, %v148_v40  ;;  %v168_v49 = vrot.slane %v167_v39, 2  ;;  %v147_v1 = vmax.f32 %v145_v43, %v146_v53 }
  0xa3   :  { %v115_v45 = vpop.f32.mrf.mxu0  ;;  %v188_v24 = vpack.c.bf16 %v165_v15, %v165_v15 }
  0xa4   :  { %v134_v47 = vmax.f32 %v124_v42, 0.0  ;;  %v150_v50 = vrot.slane %v149_v44, 2  ;;  %v116_v51 = vadd.f32 %v413_v10, %v115_v45  ;;  %v169_v59 = vmax.f32 %v167_v39, %v168_v49 }
  0xa5   :  { %v185_v12 = vpack.c.bf16 %v147_v1, %v147_v1  ;;  %v224_v34 = vunpack.c.l.b16 %v188_v24 }
  0xa6   :  { %v172_v52 = vrot.slane %v134_v47, 4  ;;  %v151_v54 = vmax.f32 %v149_v44, %v150_v50  ;;  %v131_v55 = vmax.f32 %v116_v51, 0.0  ;;  %v170_v8 = vrot.slane %v169_v59, 1 }
  0xa7   :  { %v221_v21 = vunpack.c.l.b16 %v185_v12 }
  0xa8   :  { %v173_v57 = vmax.f32 %v134_v47, %v172_v52  ;;  %v152_v60 = vrot.slane %v151_v54, 1  ;;  %v154_v61 = vrot.slane %v131_v55, 4  ;;  %v171_v19 = vmax.f32 %v169_v59, %v170_v8  ;;  %v414_v47 = vld [vmem:[%s539_s4] ss:$0 sm:$0xff] }
  0xa9   :  { %v125_v62 = vpop.f32.mrf.mxu2  ;;  %v229_v31 = vsel %vm228_vm1, %v221_v21, %v220_v27 }
  0xaa   :  { %v174_v63 = vrot.slane %v173_v57, 2  ;;  %v126_v0 = vadd.f32 %v413_v10, %v125_v62  ;;  %v155_v2 = vmax.f32 %v131_v55, %v154_v61  ;;  %v153_v4 = vmax.f32 %v151_v54, %v152_v60 }
  0xab   :  { %v189_v28 = vpack.c.bf16 %v171_v19, %v171_v19 }
  0xac   :  { %v175_v5 = vmax.f32 %v173_v57, %v174_v63  ;;  %v135_v6 = vmax.f32 %v126_v0, 0.0  ;;  %v156_v9 = vrot.slane %v155_v2, 2  ;;  %v186_v16 = vpack.c.bf16 %v153_v4, %v153_v4 }
  0xad   :  { %v225_v37 = vunpack.c.l.b16 %v189_v28 }
  0xae   :  { %v178_v11 = vrot.slane %v135_v6, 4  ;;  %v176_v13 = vrot.slane %v175_v5, 1  ;;  %v157_v14 = vmax.f32 %v155_v2, %v156_v9  ;;  %v222_v25 = vunpack.c.l.b16 %v186_v16 }
  0xb0   :  { %v179_v17 = vmax.f32 %v135_v6, %v178_v11  ;;  %v158_v20 = vrot.slane %v157_v14, 1  ;;  %v177_v22 = vmax.f32 %v175_v5, %v176_v13  ;;  %v231_v35 = vsel %vm230_vm2, %v222_v25, %v229_v31 }
  0xb2   :  { %v180_v10 = vrot.slane %v179_v17, 2  ;;  %v159_v23 = vmax.f32 %v157_v14, %v158_v20  ;;  %v190_v32 = vpack.c.bf16 %v177_v22, %v177_v22 }
  0xb4   :  { %v181_v26 = vmax.f32 %v179_v17, %v180_v10  ;;  %v187_v29 = vpack.c.bf16 %v159_v23, %v159_v23  ;;  %v226_v41 = vunpack.c.l.b16 %v190_v32 }
  0xb6   :  { %v182_v30 = vrot.slane %v181_v26, 1  ;;  %v223_v33 = vunpack.c.l.b16 %v187_v29 }
  0xb8   :  { %v183_v36 = vmax.f32 %v181_v26, %v182_v30  ;;  %v233_v38 = vsel %vm232_vm3, %v223_v33, %v231_v35 }
  0xb9   :  { %v235_v40 = vsel %vm234_vm4, %v224_v34, %v233_v38 }
  0xba   :  { %v191_v39 = vpack.c.bf16 %v183_v36, %v183_v36  ;;  %v237_v42 = vsel %vm236_vm5, %v225_v37, %v235_v40 }
  0xbb   :  { %v239_v44 = vsel %vm238_vm6, %v226_v41, %v237_v42 }
  0xbc   :  { %v227_v43 = vunpack.c.l.b16 %v191_v39 }
  0xbe   :  { %v241_v45 = vsel %vm240_vm7, %v227_v43, %v239_v44 }
  0xbf   :  { %v242_v46 = vpack.c.b16 %v241_v45, %v241_v45 }
  0xc1   :  { %300 = vmatmul.bf16.vlgmr.msra.gmra.mxu1 %v242_v46 }
 0x13e   :  { %v301_v48 = vpop.f32.mrf.mxu1 }
 0x13f   :  { %v302_v49 = vadd.f32 %v414_v47, %v301_v48 }
 0x141   :  { %305 = vmax.xlane.f32.xlu0 %v302_v49 }
 0x146   :  { %v303_v50 = vpop.f32.mrf.mxu1 }
 0x1b4   :  { %v306_v51 = vpop.xlane.xlu0 %305 }
 0x1b5   :  { %v307_v52 = vsub.f32 %v302_v49, %v306_v51 }
 0x1b7   :  { %v308_v53 = vmul.f32 1.442695, %v307_v52 }
 0x1b9   :  { %415 = vpow2.f32 %v308_v53 }
 0x1bf   :  { %v416_v54 = vpop.eup %415 }
 0x1c0   :  { %310 = vadd.xlane.f32.xlu0 %v416_v54 }
 0x233   :  { %v311_v55 = vpop.xlane.xlu0 %310 }
 0x234   :  { %417 = vlog2.f32 %v311_v55 }
 0x23a   :  { %v418_v56 = vpop.eup %417 }
 0x23b   :  { %v313_v57 = vmul.f32 0.6931472, %v418_v56 }
 0x23d   :  { %v314_v58 = vsub.f32 %v307_v52, %v313_v57 }
 0x23f   :  { %315 = vst [vmem:[#allocation5] sm:$0xff] %v314_v58 }
 0x240   :  { %326 = dma.vmem_to_hbm [thread:$0]  %s322_s13, 128, %s324_s16, [#allocation4]  }
 0x241   :  { %469 = dma.done.wait [#allocation4], 128  }
 0x242   :  { %470 = vsyncadd [#allocation4], 4294967168 }
 0x243   :  { %331 = vsyncpa [#allocation3], 1 }
 0x244   :  { %332 = vsyncpa [#allocation4], 1 }

</bundles_post_ra>
